<compile_context>
chip_gen: v5e
topology: v5e:2x2
jax: 0.10.0
libtpu: 0.0.40
codegen_flags: <defaults>
</compile_context>

<pallas_src>
from functools import partial

import numpy as np
import jax
import jax.numpy as jnp
from jax.experimental import pallas as pl
from jax.experimental.pallas import tpu as pltpu

_CompilerParams = getattr(pltpu, "CompilerParams", None)
if _CompilerParams is None:  # older JAX naming fallback
    _CompilerParams = pltpu.TPUCompilerParams  # type: ignore[attr-defined]


# ---------------------------------------------------------------------------
# Generation-aware VMEM budgeting
# ---------------------------------------------------------------------------
def _vmem_limit_bytes():
    """Pick vmem_limit_bytes from the physical per-core VMEM, with headroom."""
    cap = None
    try:
        info = pltpu.get_tpu_info()
        cap = getattr(info, "vmem_capacity_bytes", None)
        cap = int(cap) if cap is not None else None
    except Exception:
        cap = None
    if cap is None:
        cap = 64 * 1024 * 1024  # conservative: assume v7x-sized (64 MiB / TC) VMEM
    if cap <= 64 * 1024 * 1024:
        return 48 * 1024 * 1024                      # v7x: leave compiler-scratch headroom
    return min(cap - 24 * 1024 * 1024, 104 * 1024 * 1024)   # v5e / v6e (128 MiB physical)


# ---------------------------------------------------------------------------
# Tiling helpers
# ---------------------------------------------------------------------------
def _pick_tile(dim, candidates):
    """Largest candidate that evenly divides `dim`; else the full dim (always layout-legal)."""
    for c in candidates:
        if dim >= c and dim % c == 0:
            return c
    return dim


def _pick_attention_tiles(num_heads, seq, head_dim, dtype_bytes, budget_bytes):
    """Pick (G heads/step, TQ query rows/step) so one grid step's working set fits `budget`.

    Working-set model (double-buffered pipelined blocks + f32 score/prob temporaries):
      scores/probs : 2 * G * TQ * N * 4
      attn block   : 2 * G * TQ * N * bytes
      q + ctx      : 4 * G * TQ * lane(D) * bytes
      k + v        : 4 * G * N  * lane(D) * bytes      (K/V stay resident across TQ steps)
    """
    lane_d = max(head_dim, 128)  # lane padding of the minor dim

    def step_bytes(g, tq):
        return (2 * g * tq * seq * 4
                + 2 * g * tq * seq * dtype_bytes
                + 4 * g * tq * lane_d * dtype_bytes
                + 4 * g * seq * lane_d * dtype_bytes)

    tq_cands = [seq] + [t for t in (1024, 512, 256, 128, 64, 32, 16, 8)
                        if t < seq and seq % t == 0]
    g_cands = [g for g in range(num_heads, 0, -1) if num_heads % g == 0]

    best, best_area = (1, tq_cands[-1]), -1
    for tq in tq_cands:
        for g in g_cands:
            if step_bytes(g, tq) <= budget_bytes and g * tq > best_area:
                best, best_area = (g, tq), g * tq
    return best


# ---------------------------------------------------------------------------
# Linear kernels: y = x @ Wt (+ b), Wt already in (K, Nout) layout
# ---------------------------------------------------------------------------
def _matmul_kernel(x_ref, w_ref, o_ref, acc_ref):
    @pl.when(pl.program_id(2) == 0)
    def _():
        acc_ref[...] = jnp.zeros_like(acc_ref)

    acc_ref[...] += jnp.dot(x_ref[...], w_ref[...], preferred_element_type=jnp.float32)

    @pl.when(pl.program_id(2) == pl.num_programs(2) - 1)
    def _():
        o_ref[...] = acc_ref[...].astype(o_ref.dtype)


def _matmul_bias_kernel(x_ref, w_ref, b_ref, o_ref, acc_ref):
    @pl.when(pl.program_id(2) == 0)
    def _():
        acc_ref[...] = jnp.zeros_like(acc_ref)

    acc_ref[...] += jnp.dot(x_ref[...], w_ref[...], preferred_element_type=jnp.float32)

    @pl.when(pl.program_id(2) == pl.num_programs(2) - 1)
    def _():
        o_ref[...] = (acc_ref[...] + b_ref[...].astype(jnp.float32)).astype(o_ref.dtype)


def pallas_linear(x2d, w_t, bias=None, *, vmem_limit):
    """x2d: (M, K); w_t: (K, Nout) [already transposed]; bias: (Nout,) or None -> (M, Nout)."""
    M, K = x2d.shape
    K2, Nout = w_t.shape
    assert K == K2, (x2d.shape, w_t.shape)

    big = vmem_limit >= 80 * 1024 * 1024   # 128-MiB VMEM parts (v5e/v6e) take larger tiles
    TM = _pick_tile(M, (512, 256, 128, 64, 32, 16, 8) if big else (256, 128, 64, 32, 16, 8))
    TN = _pick_tile(Nout, (512, 256, 128) if big else (256, 128))
    TK = _pick_tile(K, (1024, 512, 256, 128) if big else (512, 256, 128))
    grid = (M // TM, Nout // TN, K // TK)

    in_specs = [
        pl.BlockSpec((TM, TK), lambda i, j, k: (i, k)),
        pl.BlockSpec((TK, TN), lambda i, j, k: (k, j)),
    ]
    args = (x2d, w_t)
    kernel = _matmul_kernel
    if bias is not None:
        in_specs.append(pl.BlockSpec((1, TN), lambda i, j, k: (0, j)))
        args = (x2d, w_t, bias.reshape(1, Nout))
        kernel = _matmul_bias_kernel

    return pl.pallas_call(
        kernel,
        grid=grid,
        in_specs=in_specs,
        out_specs=pl.BlockSpec((TM, TN), lambda i, j, k: (i, j)),
        out_shape=jax.ShapeDtypeStruct((M, Nout), x2d.dtype),
        scratch_shapes=[pltpu.VMEM((TM, TN), jnp.float32)],
        compiler_params=_CompilerParams(
            dimension_semantics=("parallel", "parallel", "arbitrary"),
            vmem_limit_bytes=vmem_limit),
    )(*args)


# ---------------------------------------------------------------------------
# Attention core: one batch element x G heads x TQ query rows per grid step
# ---------------------------------------------------------------------------
def _attn_kernel(q_ref, k_ref, v_ref, o_ref, a_ref, *, scale):
    # q: (G, TQ, D); k/v: (G, N, D); o: (G, TQ, D); a: (G, TQ, N)
    q = q_ref[...] * scale                       # fold scale into Q: O(G*TQ*D) multiplies
    k = k_ref[...]
    v = v_ref[...]

    s = jnp.einsum("gqd,gkd->gqk", q, k,
                   preferred_element_type=jnp.float32)                  # (G, TQ, N) f32
    s = s - jnp.max(s, axis=-1, keepdims=True)                          # stable softmax
    p = jnp.exp(s)
    # exact reciprocal keeps 1e-5 agreement with the f32 reference
    p = p * pl.reciprocal(jnp.sum(p, axis=-1, keepdims=True), approx=False)

    p_out = p.astype(a_ref.dtype)                # single cast, reused (a.dtype == v.dtype)
    a_ref[...] = p_out
    ctx = jnp.einsum("gqk,gkd->gqd", p_out, v,
                     preferred_element_type=jnp.float32)                 # (G, TQ, D)
    o_ref[...] = ctx.astype(o_ref.dtype)


def pallas_attention_core(qkv_t, scale, *, vmem_limit):
    """qkv_t: (3, B, H, N, D) -> (out (B,H,N,D), attn (B,H,N,N)).

    The same (3,B,H,N,D) buffer is passed three times with different index_maps so q/k/v are
    never materialized as separate HBM arrays.  K/V blocks are indexed only by (b, hg), so
    Pallas keeps them resident (no re-DMA) while the inner TQ axis sweeps the query rows.
    """
    _, B, H, N, D = qkv_t.shape
    dtype = qkv_t.dtype
    budget = min(vmem_limit // 3, 40 * 1024 * 1024)   # ~16 MiB/step on v7x, ~34 MiB on v6e
    G, TQ = _pick_attention_tiles(H, N, D, dtype.itemsize, budget)

    return pl.pallas_call(
        partial(_attn_kernel, scale=scale),
        grid=(B, H // G, N // TQ),
        in_specs=[
            pl.BlockSpec((None, None, G, TQ, D), lambda b, hg, tq: (0, b, hg, tq, 0)),  # q
            pl.BlockSpec((None, None, G, N, D), lambda b, hg, tq: (1, b, hg, 0, 0)),    # k
            pl.BlockSpec((None, None, G, N, D), lambda b, hg, tq: (2, b, hg, 0, 0)),    # v
        ],
        out_specs=[
            pl.BlockSpec((None, G, TQ, D), lambda b, hg, tq: (b, hg, tq, 0)),
            pl.BlockSpec((None, G, TQ, N), lambda b, hg, tq: (b, hg, tq, 0)),
        ],
        out_shape=(
            jax.ShapeDtypeStruct((B, H, N, D), dtype),
            jax.ShapeDtypeStruct((B, H, N, N), dtype),
        ),
        compiler_params=_CompilerParams(
            # tq kept "arbitrary" so each core reuses its resident K/V across query tiles;
            # batch x head-group axes provide the megacore parallelism.
            dimension_semantics=("parallel", "parallel", "arbitrary"),
            vmem_limit_bytes=vmem_limit),
    )(qkv_t, qkv_t, qkv_t)


# ---------------------------------------------------------------------------
# Full forward (mirrors PyTorch Attention.forward)
# ---------------------------------------------------------------------------
def attention_forward(x, qkv_w, proj_w, proj_b, num_heads, *, compute_dtype=None):
    """x: (B,N,C); qkv_w: (3C,C); proj_w: (C,C); proj_b: (C,).  Returns (out, attn).

    Weights are in PyTorch nn.Linear layout (out_features, in_features); they are transposed
    once per call in the wrapper (single XLA relayout, amortized over all rows) so the matmul
    kernels contract a plain (TM,TK)@(TK,TN) without per-tile re-layout.
    """
    B, N, C = x.shape
    H = num_heads
    D = C // H
    scale = float(D) ** -0.5
    vmem_limit = _vmem_limit_bytes()

    if compute_dtype is not None:  # optional bf16 path (relaxes tolerance vs f32 reference)
        x = x.astype(compute_dtype)
        qkv_w = qkv_w.astype(compute_dtype)
        proj_w = proj_w.astype(compute_dtype)
        proj_b = proj_b.astype(compute_dtype)

    # qkv projection (qkv_bias=False -> no bias kernel variant, no fake zero-bias add)
    x2d = x.reshape(B * N, C)
    qkv2d = pallas_linear(x2d, jnp.transpose(qkv_w), bias=None,
                          vmem_limit=vmem_limit)                       # (B*N, 3C)

    # Head split (single fused XLA relayout; see TODO(synk) at top of file).
    qkv_t = qkv2d.reshape(B, N, 3, H, D).transpose(2, 0, 3, 1, 4)      # (3, B, H, N, D)

    out_bhnd, attn = pallas_attention_core(qkv_t, scale, vmem_limit=vmem_limit)

    # TODO(synk): fold this transpose into the attention out_spec ((B,N,C) lane-dense stores).
    out2d = out_bhnd.transpose(0, 2, 1, 3).reshape(B * N, C)           # (B*N, C)
    out = pallas_linear(out2d, jnp.transpose(proj_w), bias=proj_b,
                        vmem_limit=vmem_limit).reshape(B, N, C)
    return out, attn


# ---------------------------------------------------------------------------
# Pure-JAX reference (for correctness check)
# ---------------------------------------------------------------------------
def attention_reference(x, qkv_w, proj_w, proj_b, num_heads):
    B, N, C = x.shape
    D = C // num_heads
    scale = D ** (-0.5)
    qkv = (x @ qkv_w.T).reshape(B, N, 3, num_heads, D).transpose(2, 0, 3, 1, 4)
    q, k, v = qkv[0], qkv[1], qkv[2]
    attn = (q @ jnp.swapaxes(k, -2, -1)) * scale
    attn = jax.nn.softmax(attn, axis=-1)
    out = (attn @ v).transpose(0, 2, 1, 3).reshape(B, N, C)
    out = out @ proj_w.T + proj_b
    return out, attn


# ---------------------------------------------------------------------------
if __name__ == "__main__":
    B, N, C, H = 2, 8, 32, 8   # head_dim = 4

    key = jax.random.PRNGKey(0)
    kx, kw1, kw2, kb2 = jax.random.split(key, 4)
    x = jax.random.normal(kx, (B, N, C), jnp.float32)
    # Parameter shapes follow nn.Linear: weight is (out_features, in_features)
    qkv_w = 0.05 * jax.random.normal(kw1, (3 * C, C), jnp.float32)     # qkv_bias=False
    proj_w = 0.05 * jax.random.normal(kw2, (C, C), jnp.float32)
    proj_b = 0.05 * jax.random.normal(kb2, (C,), jnp.float32)

    fwd = jax.jit(partial(attention_forward, num_heads=H))
    out, attn = fwd(x, qkv_w, proj_w, proj_b)
    jax.block_until_ready((out, attn))

    ref_out, ref_attn = attention_reference(x, qkv_w, proj_w, proj_b, num_heads=H)
    np.testing.assert_allclose(np.asarray(out), np.asarray(ref_out), rtol=1e-5, atol=1e-5)
    np.testing.assert_allclose(np.asarray(attn), np.asarray(ref_attn), rtol=1e-5, atol=1e-5)

    print("KERNEL_OK")
</pallas_src>

<mosaic_0001>
module attributes {stable_mosaic.version = 11 : i64} {
  func.func @_matmul_kernel(%arg0: i32, %arg1: i32, %arg2: i32, %arg3: memref<16x32xf32, #tpu.memory_space<vmem>>, %arg4: memref<32x96xf32, #tpu.memory_space<vmem>>, %arg5: memref<16x96xf32, #tpu.memory_space<vmem>>, %arg6: memref<16x96xf32, #tpu.memory_space<vmem>>) attributes {dimension_semantics = [#tpu.dimension_semantics<parallel>, #tpu.dimension_semantics<parallel>, #tpu.dimension_semantics<arbitrary>], iteration_bounds = array<i64: 1, 1, 1>, scalar_prefetch = 0 : i64, scratch_operands = 1 : i64, tpu.core_type = #tpu.core_type<tc>, window_params = [{transform_indices = @transform_0, window_bounds = array<i64: 16, 32>}, {transform_indices = @transform_1, window_bounds = array<i64: 32, 96>}, {transform_indices = @transform_2, window_bounds = array<i64: 16, 96>}]} {
    %c0_i32 = arith.constant 0 : i32
    %0 = arith.cmpi eq, %arg2, %c0_i32 : i32
    %1 = arith.extui %0 : i1 to i32
    %c0_i32_0 = arith.constant 0 : i32
    %2 = arith.cmpi ne, %1, %c0_i32_0 : i32
    scf.if %2 {
      %cst_10 = arith.constant 0.000000e+00 : f32
      %12 = vector.broadcast %cst_10 : f32 to vector<16x96xf32>
      %c0_11 = arith.constant 0 : index
      %c0_12 = arith.constant 0 : index
      %13 = vector.load %arg6[%c0_11, %c0_12] : memref<16x96xf32, #tpu.memory_space<vmem>>, vector<16x96xf32>
      tpu.vector_store %arg6[%c0_11, %c0_12], %12 {strides = array<i32>} : memref<16x96xf32, #tpu.memory_space<vmem>>, vector<16x96xf32>,
    } else {
    }
    %c0 = arith.constant 0 : index
    %c0_1 = arith.constant 0 : index
    %3 = vector.load %arg6[%c0, %c0_1] : memref<16x96xf32, #tpu.memory_space<vmem>>, vector<16x96xf32>
    %c0_2 = arith.constant 0 : index
    %c0_3 = arith.constant 0 : index
    %4 = vector.load %arg3[%c0_2, %c0_3] : memref<16x32xf32, #tpu.memory_space<vmem>>, vector<16x32xf32>
    %c0_4 = arith.constant 0 : index
    %c0_5 = arith.constant 0 : index
    %5 = vector.load %arg4[%c0_4, %c0_5] : memref<32x96xf32, #tpu.memory_space<vmem>>, vector<32x96xf32>
    %cst = arith.constant dense<0.000000e+00> : vector<16x96xf32>
    %6 = tpu.matmul %4, %5, %cst {dimension_numbers = #tpu.dot_dimension_numbers<[1], [0], [0], [1], [0, 0, 1, 1], [], []>} : vector<16x32xf32>, vector<32x96xf32>, vector<16x96xf32> -> vector<16x96xf32>
    %7 = arith.addf %3, %6 : vector<16x96xf32>
    %c0_6 = arith.constant 0 : index
    %c0_7 = arith.constant 0 : index
    %8 = vector.load %arg6[%c0_6, %c0_7] : memref<16x96xf32, #tpu.memory_space<vmem>>, vector<16x96xf32>
    tpu.vector_store %arg6[%c0_6, %c0_7], %7 {strides = array<i32>} : memref<16x96xf32, #tpu.memory_space<vmem>>, vector<16x96xf32>,
    %c0_i32_8 = arith.constant 0 : i32
    %9 = arith.cmpi eq, %arg2, %c0_i32_8 : i32
    %10 = arith.extui %9 : i1 to i32
    %c0_i32_9 = arith.constant 0 : i32
    %11 = arith.cmpi ne, %10, %c0_i32_9 : i32
    scf.if %11 {
      %c0_10 = arith.constant 0 : index
      %c0_11 = arith.constant 0 : index
      %12 = vector.load %arg6[%c0_10, %c0_11] : memref<16x96xf32, #tpu.memory_space<vmem>>, vector<16x96xf32>
      %c0_12 = arith.constant 0 : index
      %c0_13 = arith.constant 0 : index
      %13 = vector.load %arg5[%c0_12, %c0_13] : memref<16x96xf32, #tpu.memory_space<vmem>>, vector<16x96xf32>
      tpu.vector_store %arg5[%c0_12, %c0_13], %12 {strides = array<i32>} : memref<16x96xf32, #tpu.memory_space<vmem>>, vector<16x96xf32>,
    } else {
    }
    return
  }
  func.func @transform_0(%arg0: i32, %arg1: i32, %arg2: i32) -> (i32, i32) {
    %c0_i32 = arith.constant 0 : i32
    return %arg0, %arg2 : i32, i32
  }
  func.func @transform_1(%arg0: i32, %arg1: i32, %arg2: i32) -> (i32, i32) {
    %c0_i32 = arith.constant 0 : i32
    return %arg2, %arg1 : i32, i32
  }
  func.func @transform_2(%arg0: i32, %arg1: i32, %arg2: i32) -> (i32, i32) {
    %c0_i32 = arith.constant 0 : i32
    return %arg0, %arg1 : i32, i32
  }
}

module attributes {stable_mosaic.version = 11 : i64} {
  func.func @_matmul_bias_kernel(%arg0: i32, %arg1: i32, %arg2: i32, %arg3: memref<16x32xf32, #tpu.memory_space<vmem>>, %arg4: memref<32x32xf32, #tpu.memory_space<vmem>>, %arg5: memref<1x32xf32, #tpu.memory_space<vmem>>, %arg6: memref<16x32xf32, #tpu.memory_space<vmem>>, %arg7: memref<16x32xf32, #tpu.memory_space<vmem>>) attributes {dimension_semantics = [#tpu.dimension_semantics<parallel>, #tpu.dimension_semantics<parallel>, #tpu.dimension_semantics<arbitrary>], iteration_bounds = array<i64: 1, 1, 1>, scalar_prefetch = 0 : i64, scratch_operands = 1 : i64, tpu.core_type = #tpu.core_type<tc>, window_params = [{transform_indices = @transform_0, window_bounds = array<i64: 16, 32>}, {transform_indices = @transform_1, window_bounds = array<i64: 32, 32>}, {transform_indices = @transform_2, window_bounds = array<i64: 1, 32>}, {transform_indices = @transform_3, window_bounds = array<i64: 16, 32>}]} {
    %c0_i32 = arith.constant 0 : i32
    %0 = arith.cmpi eq, %arg2, %c0_i32 : i32
    %1 = arith.extui %0 : i1 to i32
    %c0_i32_0 = arith.constant 0 : i32
    %2 = arith.cmpi ne, %1, %c0_i32_0 : i32
    scf.if %2 {
      %cst_10 = arith.constant 0.000000e+00 : f32
      %12 = vector.broadcast %cst_10 : f32 to vector<16x32xf32>
      %c0_11 = arith.constant 0 : index
      %c0_12 = arith.constant 0 : index
      %13 = vector.load %arg7[%c0_11, %c0_12] : memref<16x32xf32, #tpu.memory_space<vmem>>, vector<16x32xf32>
      tpu.vector_store %arg7[%c0_11, %c0_12], %12 {strides = array<i32>} : memref<16x32xf32, #tpu.memory_space<vmem>>, vector<16x32xf32>,
    } else {
    }
    %c0 = arith.constant 0 : index
    %c0_1 = arith.constant 0 : index
    %3 = vector.load %arg7[%c0, %c0_1] : memref<16x32xf32, #tpu.memory_space<vmem>>, vector<16x32xf32>
    %c0_2 = arith.constant 0 : index
    %c0_3 = arith.constant 0 : index
    %4 = vector.load %arg3[%c0_2, %c0_3] : memref<16x32xf32, #tpu.memory_space<vmem>>, vector<16x32xf32>
    %c0_4 = arith.constant 0 : index
    %c0_5 = arith.constant 0 : index
    %5 = vector.load %arg4[%c0_4, %c0_5] : memref<32x32xf32, #tpu.memory_space<vmem>>, vector<32x32xf32>
    %cst = arith.constant dense<0.000000e+00> : vector<16x32xf32>
    %6 = tpu.matmul %4, %5, %cst {dimension_numbers = #tpu.dot_dimension_numbers<[1], [0], [0], [1], [0, 0, 1, 1], [], []>} : vector<16x32xf32>, vector<32x32xf32>, vector<16x32xf32> -> vector<16x32xf32>
    %7 = arith.addf %3, %6 : vector<16x32xf32>
    %c0_6 = arith.constant 0 : index
    %c0_7 = arith.constant 0 : index
    %8 = vector.load %arg7[%c0_6, %c0_7] : memref<16x32xf32, #tpu.memory_space<vmem>>, vector<16x32xf32>
    tpu.vector_store %arg7[%c0_6, %c0_7], %7 {strides = array<i32>} : memref<16x32xf32, #tpu.memory_space<vmem>>, vector<16x32xf32>,
    %c0_i32_8 = arith.constant 0 : i32
    %9 = arith.cmpi eq, %arg2, %c0_i32_8 : i32
    %10 = arith.extui %9 : i1 to i32
    %c0_i32_9 = arith.constant 0 : i32
    %11 = arith.cmpi ne, %10, %c0_i32_9 : i32
    scf.if %11 {
      %c0_10 = arith.constant 0 : index
      %c0_11 = arith.constant 0 : index
      %12 = vector.load %arg7[%c0_10, %c0_11] : memref<16x32xf32, #tpu.memory_space<vmem>>, vector<16x32xf32>
      %c0_12 = arith.constant 0 : index
      %c0_13 = arith.constant 0 : index
      %13 = vector.load %arg5[%c0_12, %c0_13] : memref<1x32xf32, #tpu.memory_space<vmem>>, vector<1x32xf32>
      %14 = vector.broadcast %13 : vector<1x32xf32> to vector<16x32xf32>
      %15 = arith.addf %12, %14 : vector<16x32xf32>
      %c0_14 = arith.constant 0 : index
      %c0_15 = arith.constant 0 : index
      %16 = vector.load %arg6[%c0_14, %c0_15] : memref<16x32xf32, #tpu.memory_space<vmem>>, vector<16x32xf32>
      tpu.vector_store %arg6[%c0_14, %c0_15], %15 {strides = array<i32>} : memref<16x32xf32, #tpu.memory_space<vmem>>, vector<16x32xf32>,
    } else {
    }
    return
  }
  func.func @transform_0(%arg0: i32, %arg1: i32, %arg2: i32) -> (i32, i32) {
    %c0_i32 = arith.constant 0 : i32
    return %arg0, %arg2 : i32, i32
  }
  func.func @transform_1(%arg0: i32, %arg1: i32, %arg2: i32) -> (i32, i32) {
    %c0_i32 = arith.constant 0 : i32
    return %arg2, %arg1 : i32, i32
  }
  func.func @transform_2(%arg0: i32, %arg1: i32, %arg2: i32) -> (i32, i32) {
    %c0_i32 = arith.constant 0 : i32
    %c0_i32_0 = arith.constant 0 : i32
    return %c0_i32, %arg1 : i32, i32
  }
  func.func @transform_3(%arg0: i32, %arg1: i32, %arg2: i32) -> (i32, i32) {
    %c0_i32 = arith.constant 0 : i32
    return %arg0, %arg1 : i32, i32
  }
}

module attributes {stable_mosaic.version = 11 : i64} {
  func.func @_attn_kernel(%arg0: i32, %arg1: i32, %arg2: i32, %arg3: memref<1x1x8x8x4xf32, #tpu.memory_space<vmem>>, %arg4: memref<1x1x8x8x4xf32, #tpu.memory_space<vmem>>, %arg5: memref<1x1x8x8x4xf32, #tpu.memory_space<vmem>>, %arg6: memref<1x8x8x4xf32, #tpu.memory_space<vmem>>, %arg7: memref<1x8x8x8xf32, #tpu.memory_space<vmem>>) attributes {dimension_semantics = [#tpu.dimension_semantics<parallel>, #tpu.dimension_semantics<parallel>, #tpu.dimension_semantics<arbitrary>], iteration_bounds = array<i64: 2, 1, 1>, scalar_prefetch = 0 : i64, scratch_operands = 0 : i64, tpu.core_type = #tpu.core_type<tc>, window_params = [{transform_indices = @transform_0, window_bounds = array<i64: 1, 1, 8, 8, 4>}, {transform_indices = @transform_1, window_bounds = array<i64: 1, 1, 8, 8, 4>}, {transform_indices = @transform_2, window_bounds = array<i64: 1, 1, 8, 8, 4>}, {transform_indices = @transform_3, window_bounds = array<i64: 1, 8, 8, 4>}, {transform_indices = @transform_4, window_bounds = array<i64: 1, 8, 8, 8>}]} {
    %c0 = arith.constant 0 : index
    %c0_0 = arith.constant 0 : index
    %c0_1 = arith.constant 0 : index
    %c0_2 = arith.constant 0 : index
    %c0_3 = arith.constant 0 : index
    %0 = vector.load %arg3[%c0, %c0_0, %c0_1, %c0_2, %c0_3] : memref<1x1x8x8x4xf32, #tpu.memory_space<vmem>>, vector<1x1x8x8x4xf32>
    %1 = vector.shape_cast %0 : vector<1x1x8x8x4xf32> to vector<8x8x4xf32>
    %cst = arith.constant 5.000000e-01 : f32
    %2 = vector.broadcast %cst : f32 to vector<8x8x4xf32>
    %3 = arith.mulf %1, %2 : vector<8x8x4xf32>
    %c0_4 = arith.constant 0 : index
    %c0_5 = arith.constant 0 : index
    %c0_6 = arith.constant 0 : index
    %c0_7 = arith.constant 0 : index
    %c0_8 = arith.constant 0 : index
    %4 = vector.load %arg4[%c0_4, %c0_5, %c0_6, %c0_7, %c0_8] : memref<1x1x8x8x4xf32, #tpu.memory_space<vmem>>, vector<1x1x8x8x4xf32>
    %5 = vector.shape_cast %4 : vector<1x1x8x8x4xf32> to vector<8x8x4xf32>
    %c0_9 = arith.constant 0 : index
    %c0_10 = arith.constant 0 : index
    %c0_11 = arith.constant 0 : index
    %c0_12 = arith.constant 0 : index
    %c0_13 = arith.constant 0 : index
    %6 = vector.load %arg5[%c0_9, %c0_10, %c0_11, %c0_12, %c0_13] : memref<1x1x8x8x4xf32, #tpu.memory_space<vmem>>, vector<1x1x8x8x4xf32>
    %7 = vector.shape_cast %6 : vector<1x1x8x8x4xf32> to vector<8x8x4xf32>
    "tpu.trace_start"() <{level = 10 : i32, message = "gqd,gkd->gqk"}> : () -> ()
    %cst_14 = arith.constant dense<0.000000e+00> : vector<8x8x8xf32>
    %8 = tpu.matmul %3, %5, %cst_14 {dimension_numbers = #tpu.dot_dimension_numbers<[2], [2], [1], [1], [0, 0, 0, 1, 1, 1], [0], [0]>} : vector<8x8x4xf32>, vector<8x8x4xf32>, vector<8x8x8xf32> -> vector<8x8x8xf32>
    "tpu.trace_stop"() : () -> ()
    %cst_15 = arith.constant dense<0xFF800000> : vector<8x8xf32>
    %9 = vector.multi_reduction <maximumf>, %8, %cst_15 [2] : vector<8x8x8xf32> to vector<8x8xf32>
    %10 = vector.shape_cast %9 : vector<8x8xf32> to vector<8x8x1xf32>
    %11 = vector.broadcast %10 : vector<8x8x1xf32> to vector<8x8x8xf32>
    %12 = arith.subf %8, %11 : vector<8x8x8xf32>
    %13 = math.exp %12 : vector<8x8x8xf32>
    %cst_16 = arith.constant dense<0.000000e+00> : vector<8x8xf32>
    %14 = vector.multi_reduction <add>, %13, %cst_16 [2] : vector<8x8x8xf32> to vector<8x8xf32>
    %15 = vector.shape_cast %14 : vector<8x8xf32> to vector<8x8x1xf32>
    %16 = tpu.reciprocal %15 : vector<8x8x1xf32> -> vector<8x8x1xf32>
    %17 = vector.broadcast %16 : vector<8x8x1xf32> to vector<8x8x8xf32>
    %18 = arith.mulf %13, %17 : vector<8x8x8xf32>
    %c0_17 = arith.constant 0 : index
    %c0_18 = arith.constant 0 : index
    %c0_19 = arith.constant 0 : index
    %c0_20 = arith.constant 0 : index
    %19 = vector.load %arg7[%c0_17, %c0_18, %c0_19, %c0_20] : memref<1x8x8x8xf32, #tpu.memory_space<vmem>>, vector<1x8x8x8xf32>
    %20 = vector.shape_cast %19 : vector<1x8x8x8xf32> to vector<8x8x8xf32>
    %21 = vector.shape_cast %18 : vector<8x8x8xf32> to vector<1x8x8x8xf32>
    tpu.vector_store %arg7[%c0_17, %c0_18, %c0_19, %c0_20], %21 {strides = array<i32>} : memref<1x8x8x8xf32, #tpu.memory_space<vmem>>, vector<1x8x8x8xf32>,
    "tpu.trace_start"() <{level = 10 : i32, message = "gqk,gkd->gqd"}> : () -> ()
    %cst_21 = arith.constant dense<0.000000e+00> : vector<8x8x4xf32>
    %22 = tpu.matmul %18, %7, %cst_21 {dimension_numbers = #tpu.dot_dimension_numbers<[2], [1], [1], [2], [0, 0, 0, 1, 1, 2], [0], [0]>} : vector<8x8x8xf32>, vector<8x8x4xf32>, vector<8x8x4xf32> -> vector<8x8x4xf32>
    "tpu.trace_stop"() : () -> ()
    %c0_22 = arith.constant 0 : index
    %c0_23 = arith.constant 0 : index
    %c0_24 = arith.constant 0 : index
    %c0_25 = arith.constant 0 : index
    %23 = vector.load %arg6[%c0_22, %c0_23, %c0_24, %c0_25] : memref<1x8x8x4xf32, #tpu.memory_space<vmem>>, vector<1x8x8x4xf32>
    %24 = vector.shape_cast %23 : vector<1x8x8x4xf32> to vector<8x8x4xf32>
    %25 = vector.shape_cast %22 : vector<8x8x4xf32> to vector<1x8x8x4xf32>
    tpu.vector_store %arg6[%c0_22, %c0_23, %c0_24, %c0_25], %25 {strides = array<i32>} : memref<1x8x8x4xf32, #tpu.memory_space<vmem>>, vector<1x8x8x4xf32>,
    return
  }
  func.func @transform_0(%arg0: i32, %arg1: i32, %arg2: i32) -> (i32, i32, i32, i32, i32) {
    %c0_i32 = arith.constant 0 : i32
    %c0_i32_0 = arith.constant 0 : i32
    %c0_i32_1 = arith.constant 0 : i32
    return %c0_i32, %arg0, %arg1, %arg2, %c0_i32_0 : i32, i32, i32, i32, i32
  }
  func.func @transform_1(%arg0: i32, %arg1: i32, %arg2: i32) -> (i32, i32, i32, i32, i32) {
    %c1_i32 = arith.constant 1 : i32
    %c0_i32 = arith.constant 0 : i32
    %c0_i32_0 = arith.constant 0 : i32
    %c0_i32_1 = arith.constant 0 : i32
    return %c1_i32, %arg0, %arg1, %c0_i32, %c0_i32_0 : i32, i32, i32, i32, i32
  }
  func.func @transform_2(%arg0: i32, %arg1: i32, %arg2: i32) -> (i32, i32, i32, i32, i32) {
    %c2_i32 = arith.constant 2 : i32
    %c0_i32 = arith.constant 0 : i32
    %c0_i32_0 = arith.constant 0 : i32
    %c0_i32_1 = arith.constant 0 : i32
    return %c2_i32, %arg0, %arg1, %c0_i32, %c0_i32_0 : i32, i32, i32, i32, i32
  }
  func.func @transform_3(%arg0: i32, %arg1: i32, %arg2: i32) -> (i32, i32, i32, i32) {
    %c0_i32 = arith.constant 0 : i32
    %c0_i32_0 = arith.constant 0 : i32
    return %arg0, %arg1, %arg2, %c0_i32 : i32, i32, i32, i32
  }
  func.func @transform_4(%arg0: i32, %arg1: i32, %arg2: i32) -> (i32, i32, i32, i32) {
    %c0_i32 = arith.constant 0 : i32
    %c0_i32_0 = arith.constant 0 : i32
    return %arg0, %arg1, %arg2, %c0_i32 : i32, i32, i32, i32
  }
}

</mosaic_0001>

<bundles_post_ra>
// kernel: attention_forward.5
= control target key start
LH: loop header
LB: loop body
LE: loop exit
PB: predicated region body
PF: predicated region fallthrough
CT: control target
= control target key end

     0   :  { %vm19_vm0 = vcmask 261120   ;;  %v132_v2 = vmov 0.0   ;;  %s188_s0 = inlined_call_operand.vmem [shape: f32[16,32], index: 0, kind: input, shape index: {}]   ;;  %s189_s1 = inlined_call_operand.vmem [shape: f32[32,32], index: 1, kind: input, shape index: {}]   ;;  %s190_s2 = inlined_call_operand.vmem [shape: f32[1,32], index: 2, kind: input, shape index: {}]   ;;  %s191_s3 = inlined_call_operand.hbm [shape: f32[16,32], index: 3, kind: output, shape index: {}]  }
   0x1   :  { %v29_v0 = vld [vmem:[%s189_s1 + $0x18] sm:$0xff]  ;;  %v28_v1 = vld [vmem:[%s189_s1 + $0x10] sm:$0xff]  ;;  %20 = vst.msk [vmem:[#allocation2] sm:$0xff] %vm19_vm0, %v132_v2  ;;  %v27_v3 = vld [vmem:[%s189_s1 + $0x8] sm:$0xff] }
   0x2   :  { %49 = vmatpush.msra.mxu0 %v29_v0  ;;  %97 = vmatpush.msra.mxu1 %v29_v0  ;;  %21 = vst.msk [vmem:[#allocation2 + $0x8] sm:$0xff] %vm19_vm0, %v132_v2 }
   0x3   :  { %8 = vsyncpa [#allocation4], 0  ;;  %v26_v4 = vld [vmem:[%s189_s1] sm:$0xff]  ;;  %v25_v6 = vld [vmem:[%s188_s0 + $0x8] sm:$0xff]  ;;  %s83_s28 = sshll.u32 %s191_s3, 4  ;;  %s134_s29 = smov 128   ;;  %s84_s28 = int_to_ptr.hbm [resolvable:$true] %s83_s28 }
   0x4   :  { %50 = vmatpush.msra.mxu0 %v28_v1  ;;  %98 = vmatpush.msra.mxu1 %v28_v1  ;;  %v24_v5 = vld [vmem:[%s188_s0] sm:$0xff]  ;;  %s133_s0 = smov [#allocation3]   ;;  %s135_s30 = smov 8  }
   0x5   :  { %v105_v13 = vld [vmem:[%s190_s2] ss:$0 sm:$0xff]  ;;  %s81_s25 = sshll.u32 %s133_s0, 4  ;;  %s82_s25 = int_to_ptr.vmem [resolvable:$true] %s81_s25 }
   0x6   :  { %51 = vmatpush.msra.mxu0 %v27_v3  ;;  %99 = vmatpush.msra.mxu1 %v27_v3 }
   0x8   :  { %52 = vmatpush.msra.mxu0 %v26_v4  ;;  %100 = vmatpush.msra.mxu1 %v26_v4  ;;  %v22_v7 = vld [vmem:[#allocation2] sm:$0xff] }
   0x9   :  { %95 = vmatmul.msk.f32.vlgmr.msra.gmra.mxu0 %vm19_vm0, %v24_v5  ;;  %96 = vmatmul.msk.f32.vlgmr.msra.gmra.mxu1 %vm19_vm0, %v25_v6  ;;  %v23_v8 = vld [vmem:[#allocation2 + $0x8] sm:$0xff] }
  0x86   :  { %v54_v9 = vpop.f32.mrf.mxu0  ;;  %v57_v10 = vpop.f32.mrf.mxu1 }
  0x87   :  { %v60_v11 = vadd.f32 %v54_v9, %v22_v7  ;;  %v61_v12 = vadd.f32 %v57_v10, %v23_v8 }
  0x89   :  { %62 = vst.msk [vmem:[#allocation2] sm:$0xff] %vm19_vm0, %v60_v11 }
  0x8a   :  { %63 = vst.msk [vmem:[#allocation2 + $0x8] sm:$0xff] %vm19_vm0, %v61_v12 }
  0x90   :  { %v67_v14 = vld [vmem:[#allocation2] sm:$0xff] }
  0x91   :  { %v68_v15 = vld [vmem:[#allocation2 + $0x8] sm:$0xff]  ;;  %v73_v16 = vadd.f32 %v105_v13, %v67_v14 }
  0x92   :  { %v74_v17 = vadd.f32 %v105_v13, %v68_v15 }
  0x93   :  { %75 = vst.msk [vmem:[#allocation3] sm:$0xff] %vm19_vm0, %v73_v16 }
  0x94   :  { %76 = vst.msk [vmem:[#allocation3 + $0x8] sm:$0xff] %vm19_vm0, %v74_v17 }
  0x95   :  { %89 = dma.vmem_to_hbm [thread:$0]  %s82_s25, 256, %s84_s28, [#allocation4], %s134_s29, %s134_s29, %s135_s30  }
  0x96   :  { %130 = dma.done.wait [#allocation4], 256  }
  0x97   :  { %131 = vsyncadd [#allocation4], 4294967040 }
  0x98   :  { %94 = vsyncpa [#allocation4], 1 }

// kernel: attention_forward.3
= control target key start
LH: loop header
LB: loop body
LE: loop exit
PB: predicated region body
PF: predicated region fallthrough
CT: control target
= control target key end

     0   :  { %7 = vsyncpa [#allocation4], 0  ;;  %s207_s0 = inlined_call_operand.hbm [shape: f32[16,32], index: 0, kind: input, shape index: {}]   ;;  %s208_s1 = inlined_call_operand.hbm [shape: f32[32,96], index: 1, kind: input, shape index: {}]   ;;  %s209_s2 = inlined_call_operand.vmem [shape: f32[16,96], index: 2, kind: output, shape index: {}]  }
   0x1   :  { %s13_s11 = sshll.u32 %s207_s0, 4  ;;  %s14_s11 = int_to_ptr.hbm [resolvable:$true] %s13_s11 }
   0x2   :  { %8 = vsyncpa [#allocation6], 0  ;;  %s169_s12 = smov [#allocation3]   ;;  %s26_s16 = sshll.u32 %s208_s1, 4  ;;  %s27_s16 = int_to_ptr.hbm [resolvable:$true] %s26_s16 }
   0x3   :  { %s15_s13 = sshll.u32 %s169_s12, 4  ;;  %s170_s17 = smov 128   ;;  %s16_s13 = int_to_ptr.vmem [resolvable:$true] %s15_s13 }
   0x4   :  { %s171_s18 = smov 8   ;;  %s172_s19 = smov [#allocation5]  }
   0x5   :  { %21 = dma.hbm_to_vmem [thread:$0]  %s14_s11, 256, %s16_s13, [#allocation4], %s170_s17, %s170_s17, %s171_s18  }
   0x6   :  { %s28_s20 = sshll.u32 %s172_s19, 4  ;;  %s29_s20 = int_to_ptr.vmem [resolvable:$true] %s28_s20 }
   0x7   :  { %34 = dma.hbm_to_vmem [thread:$0]  %s27_s16, 512, %s29_s20, [#allocation6], %s170_s17, %s170_s17, %s171_s18  }
   0x8   :  { %165 = dma.done.wait [#allocation4], 256  }
   0x9   :  { %166 = vsyncadd [#allocation4], 4294967040 }
   0xa   :  { %167 = dma.done.wait [#allocation6], 512  }
   0xb   :  { %168 = vsyncadd [#allocation6], 4294966784  ;;  %vm47_vm0 = vcmask 785408   ;;  %v173_v0 = vmov 0.0   ;;  %v57_v1 = vld [vmem:[#allocation5 + $0x18] sm:$0xff]  ;;  %v56_v2 = vld [vmem:[#allocation5 + $0x10] sm:$0xff] }
   0xc   :  { %48 = vst.msk [vmem:[#allocation2] sm:$0xff] %vm47_vm0, %v173_v0  ;;  %77 = vmatpush.msra.mxu0 %v57_v1  ;;  %108 = vmatpush.msra.mxu1 %v57_v1  ;;  %v55_v3 = vld [vmem:[#allocation5 + $0x8] sm:$0xff]  ;;  %v54_v4 = vld [vmem:[#allocation5] sm:$0xff]  ;;  %v52_v5 = vld [vmem:[#allocation3] sm:$0xff]  ;;  %vm58_vm1 = vcmask 261120  }
   0xd   :  { %49 = vst.msk [vmem:[#allocation2 + $0x8] sm:$0xff] %vm47_vm0, %v173_v0  ;;  %v53_v6 = vld [vmem:[#allocation3 + $0x8] sm:$0xff] }
   0xe   :  { %78 = vmatpush.msra.mxu0 %v56_v2  ;;  %109 = vmatpush.msra.mxu1 %v56_v2 }
  0x10   :  { %79 = vmatpush.msra.mxu0 %v55_v3  ;;  %110 = vmatpush.msra.mxu1 %v55_v3 }
  0x12   :  { %80 = vmatpush.msra.mxu0 %v54_v4  ;;  %111 = vmatpush.msra.mxu1 %v54_v4 }
  0x13   :  { %106 = vmatmul.msk.f32.vlgmr.msra.gmra.mxu0 %vm58_vm1, %v52_v5  ;;  %107 = vmatmul.msk.f32.vlgmr.msra.gmra.mxu1 %vm58_vm1, %v53_v6  ;;  %v50_v7 = vld [vmem:[#allocation2] sm:$0xff] }
  0x14   :  { %v51_v8 = vld [vmem:[#allocation2 + $0x8] sm:$0xff] }
  0x90   :  { %v82_v9 = vpop.f32.mrf.mxu0  ;;  %v85_v10 = vpop.f32.mrf.mxu1 }
  0x91   :  { %v88_v11 = vadd.f32 %v82_v9, %v50_v7  ;;  %v89_v12 = vadd.f32 %v85_v10, %v51_v8 }
  0x93   :  { %91 = vst.msk [vmem:[#allocation2] sm:$0xff] %vm47_vm0, %v88_v11 }
  0x94   :  { %92 = vst.msk [vmem:[#allocation2 + $0x8] sm:$0xff] %vm47_vm0, %v89_v12 }
  0x9a   :  { %v96_v13 = vld [vmem:[#allocation2] sm:$0xff] }
  0x9b   :  { %98 = vst.msk [vmem:[%s209_s2] sm:$0xff] %vm47_vm0, %v96_v13  ;;  %v97_v14 = vld [vmem:[#allocation2 + $0x8] sm:$0xff] }
  0x9c   :  { %99 = vst.msk [vmem:[%s209_s2 + $0x8] sm:$0xff] %vm47_vm0, %v97_v14 }
  0x9d   :  { %104 = vsyncpa [#allocation4], 1 }
  0x9e   :  { %105 = vsyncpa [#allocation6], 1 }

// kernel: attention_forward.4
= control target key start
LH: loop header
LB: loop body
LE: loop exit
PB: predicated region body
PF: predicated region fallthrough
CT: control target
= control target key end

     0   :  { %10 = vsyncpa [#allocation3], 0  ;;  %s1752_s0 = inlined_call_operand.vmem [shape: f32[3,2,8,8,4], index: 0, kind: input, shape index: {}, may-alias: {0,1,2}]   ;;  %s1753_s1 = inlined_call_operand.vmem [shape: f32[3,2,8,8,4], index: 1, kind: input, shape index: {}, may-alias: {0,1,2}]   ;;  %s1754_s2 = inlined_call_operand.vmem [shape: f32[3,2,8,8,4], index: 2, kind: input, shape index: {}, may-alias: {0,1,2}]   ;;  %s1755_s3 = inlined_call_operand.vmem [shape: f32[2,8,8,4], index: 3, kind: output, shape index: {0}]   ;;  %s1756_s4 = inlined_call_operand.hbm [shape: f32[2,8,8,8], index: 4, kind: output, shape index: {1}]  }
   0x1   :  { %12 = vsyncpa [#allocation3 + $0x1], 0  ;;  %s1458_s15 = smov 0   ;;  %s1460_s16 = smov 0  }
   0x2   :  { %s1462_s17 = smov 0   ;;  %s1464_s18 = smov 0  }
   0x3   :  { %s1466_s19 = smov 0   ;;  %s1468_s20 = smov 0  }
   0x4 LB: > { %s1198_s21 = sadd.s32 4294967295, %s1429_s20   ;;  %s1199_s22 = sadd.s32 4294967294, %s1429_s20   ;;  %s1429_s20 = sphi %s1468_s20, %s18_s20   ;;  %s1425_s19 = sphi %s1466_s19, %s1769_s19   ;;  %s1421_s18 = sphi %s1464_s18, %s1768_s18   ;;  %s1417_s17 = sphi %s1462_s17, %s1767_s17   ;;  %s1413_s16 = sphi %s1460_s16, %s1766_s16   ;;  %s1409_s15 = sphi %s1458_s15, %s1765_s15  }
   0x5   : > { %s37_s23 = sadd.s32 1, %s1425_s19  ;;  %s164_s24 = sadd.s32 1, %s1417_s17 }
   0x6   : > { %p39_p0 = scmp.ge.s32.totalorder %s37_s23, 2  ;;  %p174_p1 = scmp.ne.s32.totalorder %s1417_s17, %s1413_s16 }
   0x7   : > { %p175_p2 = scmp.eq.s32.totalorder %s1198_s21, 1  ;;  %p180_p3 = scmp.ne.s32.totalorder %s1413_s16, %s1409_s15 }
   0x8   : > { %s1771_s23 = smov (%p39_p0, %s37_s23), 0  ;;  %p181_p5 = scmp.eq.s32.totalorder %s1199_s22, 1 }
   0x9   : > { %p1498_p4 = por %p175_p2, %p174_p1  ;;  %s157_s26 = ssub.s32 %s1425_s19, %s1771_s23 }
   0xa   : > { %p1202_p6 = scmp.ge.s32.totalorder %s1429_s20, 1  ;;  %p162_p7 = scmp.eq.s32.totalorder %s157_s26, 0 }
   0xb   : > { %p1505_p8 = por %p181_p5, %p180_p3  ;;  %p243_p9 = scmp.lt.s32.totalorder %s1429_s20, 3 }
   0xc   : > { %s1511_s28 = scalar_select %p162_p7, %s1417_s17, %s164_s24  }
   0xd   : > { %p244_p10 = pnand %p1202_p6, %p243_p9 }
   0xe   : > { %p309_p11 = scmp.lt.s32.totalorder (!%p244_p10), %s1421_s18, 1  ;;  %s305_s14 = sand.u32 (!%p244_p10), 1, %s1413_s16  }
   0xf   : > { %247 = sbr.rel (%p244_p10) target bundleno = 577 (0x241), region = 32  ;;  %s1203_s21 = sshll.u32 (!%p244_p10), %s305_s14, 6 }
  0x10   : > { %s1612_s22 = scalar_lea.vmem (!%p244_p10), [#allocation2], %s1203_s21  ;;  %s1261_s24 = sshll.u32 (!%p244_p10), %s1421_s18, 6 }
  0x11   : > { %s1023_s26 = sshll.u32 (!%p244_p10), %s1612_s22, 4  ;;  %s1022_s6 = scalar_lea.hbm (!%p244_p10), %s1756_s4, %s1261_s24  ;;  %s1024_s26 = int_to_ptr.vmem [resolvable:$true] %s1023_s26 }
  0x12   : > { %s1004_s8 = scalar_lea.sflag (!%p244_p10), [#allocation3], %s305_s14 }
  0x14   : > { %s310_s29 = scalar_select %p309_p11, %s1421_s18, 1  ;;  %vm389_vm0 = vcmask 31744   ;;  %vm598_vm1 = vcmask 64512  }
  0x15   : > { %s1371_s18 = scalar_lea.hbm %s1756_s4, 128 }
  0x16   : > { %s1515_s30 = sshll.u32 %s310_s29, 6 }
  0x17   : > { %s1111_s7 = scalar_lea.vmem %s1753_s1, %s1515_s30  ;;  %s1525_s10 = scalar_lea.vmem %s1752_s0, %s1515_s30 }
  0x18   : > { %v1212_v0 = vld [vmem:[%s1111_s7 + $0x80] sm:$0xff]  ;;  %v1214_v1 = vld [vmem:[%s1111_s7 + $0x90] sm:$0xff]  ;;  %v1213_v6 = vld [vmem:[%s1111_s7 + $0x88] sm:$0xff]  ;;  %s1595_s13 = scalar_lea.vmem %s1754_s2, %s1515_s30 }
  0x19   : > { %v357_v2 = vld [vmem:[%s1525_s10] sm:$0xff]  ;;  %1228 = vmatpush.xpose.msk.msra.mxu0 %vm389_vm0, %v1212_v0  ;;  %1232 = vmatpush.xpose.msk.msra.mxu2 %vm389_vm0, %v1214_v1  ;;  %v359_v4 = vld [vmem:[%s1525_s10 + $0x10] sm:$0xff]  ;;  %v1215_v8 = vld [vmem:[%s1111_s7 + $0x98] sm:$0xff] }
  0x1a   : > { %v365_v3 = vmul.f32 0.5, %v357_v2  ;;  %v1218_v5 = vld [vmem:[%s1111_s7 + $0xb0] sm:$0xff]  ;;  %v367_v7 = vmul.f32 0.5, %v359_v4  ;;  %1230 = vmatpush.xpose.msk.msra.mxu1 %vm389_vm0, %v1213_v6  ;;  %v358_v9 = vld [vmem:[%s1525_s10 + $0x8] sm:$0xff]  ;;  %v360_v10 = vld [vmem:[%s1525_s10 + $0x18] sm:$0xff]  ;;  %1234 = vmatpush.xpose.msk.msra.mxu3 %vm389_vm0, %v1215_v8 }
  0x1b   : > { %v366_v11 = vmul.f32 0.5, %v358_v9  ;;  %v368_v12 = vmul.f32 0.5, %v360_v10  ;;  %v1219_v13 = vld [vmem:[%s1111_s7 + $0xb8] sm:$0xff]  ;;  %v1217_v14 = vld [vmem:[%s1111_s7 + $0xa8] sm:$0xff]  ;;  %v1216_v15 = vld [vmem:[%s1111_s7 + $0xa0] sm:$0xff]  ;;  %s1025_s7 = sshll.u32 %s1022_s6, 4  ;;  %s1026_s7 = int_to_ptr.hbm [resolvable:$true] %s1025_s7 }
  0x1c   : > { %1229 = vmatmul.msk.f32.vlgmr.msra.gmra.mxu0 %vm389_vm0, %v365_v3  ;;  %1233 = vmatmul.msk.f32.vlgmr.msra.gmra.mxu2 %vm389_vm0, %v367_v7  ;;  %v363_v16 = vld [vmem:[%s1525_s10 + $0x30] sm:$0xff]  ;;  %v361_v17 = vld [vmem:[%s1525_s10 + $0x20] sm:$0xff]  ;;  %v362_v18 = vld [vmem:[%s1525_s10 + $0x28] sm:$0xff]  ;;  %s1365_s9 = sshra.s32 %s1026_s7, 4  ;;  %s1366_s9 = int_to_ptr.hbm [resolvable:$true] %s1365_s9 }
  0x1d   : > { %1240 = vmatpush.xpose.msk.msrb.mxu2 %vm389_vm0, %v1218_v5  ;;  %1231 = vmatmul.msk.f32.vlgmr.msra.gmra.mxu1 %vm389_vm0, %v366_v11  ;;  %v364_v19 = vld [vmem:[%s1525_s10 + $0x38] sm:$0xff]  ;;  %v371_v20 = vmul.f32 0.5, %v363_v16  ;;  %v369_v21 = vmul.f32 0.5, %v361_v17  ;;  %v370_v22 = vmul.f32 0.5, %v362_v18  ;;  %v1220_v16 = vld [vmem:[%s1595_s13 + $0x100] sm:$0xff]  ;;  %v1222_v17 = vld [vmem:[%s1595_s13 + $0x110] sm:$0xff]  ;;  %p1372_p1 = scmp.lt.s32.totalorder %s1366_s9, %s1756_s4 }
  0x1e   : > { %1242 = vmatpush.xpose.msk.msrb.mxu3 %vm389_vm0, %v1219_v13  ;;  %1238 = vmatpush.xpose.msk.msrb.mxu1 %vm389_vm0, %v1217_v14  ;;  %v372_v23 = vmul.f32 0.5, %v364_v19  ;;  %s1367_s10 = scalar_lea.hbm %s1366_s9, 64 }
  0x1f   : > { %1235 = vmatmul.msk.f32.vlgmr.msra.gmra.mxu3 %vm389_vm0, %v368_v12  ;;  %1236 = vmatpush.xpose.msk.msrb.mxu0 %vm389_vm0, %v1216_v15  ;;  %p1368_p12 = scmp.ne.s32.totalorder %s1366_s9, %s1367_s10  ;;  %p1373_p2 = scmp.lt.s32.totalorder %s1371_s18, %s1367_s10 }
  0x21   : > { %863 = vmatpush.msra.mxu2 %v1222_v17  ;;  %p1369_p13 = pnand %p1368_p12, %p1498_p4  ;;  %p1374_p3 = por %p1373_p2, %p1372_p1 }
  0x23   : > { %817 = vmatpush.msra.mxu0 %v1220_v16  ;;  %p1370_p0 = pneg %p1369_p13 }
  0x24   : > { %1241 = vmatmul.msk.f32.vlgmr.msrb.gmra.mxu2 %vm389_vm0, %v371_v20  ;;  %1237 = vmatmul.msk.f32.vlgmr.msrb.gmra.mxu0 %vm389_vm0, %v369_v21  ;;  %v1223_v20 = vld [vmem:[%s1595_s13 + $0x118] sm:$0xff]  ;;  %v1221_v21 = vld [vmem:[%s1595_s13 + $0x108] sm:$0xff] }
  0x25   : > { %1239 = vmatmul.msk.f32.vlgmr.msrb.gmra.mxu1 %vm389_vm0, %v370_v22  ;;  %886 = vmatpush.msra.mxu3 %v1223_v20  ;;  %p1375_p5 = pnand %p1374_p3, %p1370_p0 }
  0x26   : > { %840 = vmatpush.msra.mxu1 %v1221_v21 }
  0x27   : > { %1243 = vmatmul.msk.f32.vlgmr.msrb.gmra.mxu3 %vm389_vm0, %v372_v23 }
  0x99   : > { %v413_v24 = vpop.f32.mrf.mxu0 }
  0x9a   : > { %v599_v25 = vsel %vm598_vm1, %v413_v24, -inf  ;;  %v439_v26 = vpop.f32.mrf.mxu1 }
  0x9b   : > { %600 = vmax.xlane.f32.xlu1 %v599_v25  ;;  %v602_v29 = vsel %vm598_vm1, %v439_v26, -inf }
  0x9f   : > { %v465_v27 = vpop.f32.mrf.mxu2 }
  0xa0   : > { %v605_v28 = vsel %vm598_vm1, %v465_v27, -inf }
  0xa1   : > { %606 = vmax.xlane.f32.xlu0 %v605_v28  ;;  %v517_v36 = vpop.f32.mrf.mxu0 }
  0xa2   : > { %v491_v30 = vpop.f32.mrf.mxu3  ;;  %v543_v31 = vpop.f32.mrf.mxu1  ;;  %v611_v39 = vsel %vm598_vm1, %v517_v36, -inf }
  0xa3   : > { %603 = vmax.xlane.f32.xlu1 %v602_v29  ;;  %v608_v32 = vsel %vm598_vm1, %v491_v30, -inf  ;;  %v614_v35 = vsel %vm598_vm1, %v543_v31, -inf }
  0xa7   : > { %v569_v33 = vpop.f32.mrf.mxu2 }
  0xa8   : > { %v617_v34 = vsel %vm598_vm1, %v569_v33, -inf }
  0xa9   : > { %609 = vmax.xlane.f32.xlu0 %v608_v32  ;;  %618 = vmax.xlane.f32.xlu2 %v617_v34  ;;  %v1227_v34 = vld [vmem:[%s1595_s13 + $0x138] sm:$0xff] }
  0xaa   : > { %v595_v37 = vpop.f32.mrf.mxu3  ;;  %978 = vmatpush.msrb.mxu3 %v1227_v34 }
  0xab   : > { %615 = vmax.xlane.f32.xlu1 %v614_v35  ;;  %v620_v38 = vsel %vm598_vm1, %v595_v37, -inf  ;;  %v1224_v35 = vld [vmem:[%s1595_s13 + $0x120] sm:$0xff] }
  0xac   : > { %909 = vmatpush.msrb.mxu0 %v1224_v35 }
  0xb1   : > { %621 = vmax.xlane.f32.xlu2 %v620_v38  ;;  %612 = vmax.xlane.f32.xlu0 %v611_v39 }
 0x10e   : > { %v601_v40 = vpop.xlane.xlu1 %600 }
 0x10f   : > { %v623_v41 = vsub.f32 %v413_v24, %v601_v40 }
 0x111   : > { %v631_v42 = vmul.f32 1.442695, %v623_v41 }
 0x113   : > { %1319 = vpow2.f32 %v631_v42  ;;  %v1225_v42 = vld [vmem:[%s1595_s13 + $0x128] sm:$0xff] }
 0x114   : > { %v607_v43 = vpop.xlane.xlu0 %606  ;;  %932 = vmatpush.msrb.mxu1 %v1225_v42 }
 0x115   : > { %v625_v44 = vsub.f32 %v465_v27, %v607_v43 }
 0x116   : > { %v604_v45 = vpop.xlane.xlu1 %603 }
 0x117   : > { %v635_v46 = vmul.f32 1.442695, %v625_v44  ;;  %v624_v47 = vsub.f32 %v439_v26, %v604_v45 }
 0x119   : > { %v1559_v48 = vpop.eup %1319  ;;  %1321 = vpow2.f32 %v635_v46  ;;  %v633_v50 = vmul.f32 1.442695, %v624_v47 }
 0x11a   : > { %v647_v49 = vsel %vm598_vm1, %v1559_v48, 0.0 }
 0x11b   : > { %648 = vadd.xlane.f32.xlu1 %v647_v49  ;;  %1323 = vpow2.f32 %v633_v50 }
 0x11c   : > { %v610_v51 = vpop.xlane.xlu0 %609  ;;  %v619_v52 = vpop.xlane.xlu2 %618 }
 0x11d   : > { %v626_v53 = vsub.f32 %v491_v30, %v610_v51  ;;  %v629_v56 = vsub.f32 %v569_v33, %v619_v52  ;;  %v1226_v33 = vld [vmem:[%s1595_s13 + $0x130] sm:$0xff] }
 0x11e   : > { %v616_v59 = vpop.xlane.xlu1 %615  ;;  %955 = vmatpush.msrb.mxu2 %v1226_v33 }
 0x11f   : > { %v1563_v54 = vpop.eup %1321  ;;  %v637_v55 = vmul.f32 1.442695, %v626_v53  ;;  %v643_v58 = vmul.f32 1.442695, %v629_v56  ;;  %v628_v2 = vsub.f32 %v543_v31, %v616_v59 }
 0x120   : > { %v653_v57 = vsel %vm598_vm1, %v1563_v54, 0.0 }
 0x121   : > { %1325 = vpow2.f32 %v637_v55  ;;  %654 = vadd.xlane.f32.xlu2 %v653_v57  ;;  %v1567_v62 = vpop.eup %1323  ;;  %v641_v7 = vmul.f32 1.442695, %v628_v2 }
 0x122   : > { %1327 = vpow2.f32 %v643_v58  ;;  %v650_v5 = vsel %vm598_vm1, %v1567_v62, 0.0 }
 0x124   : > { %v622_v60 = vpop.xlane.xlu2 %621  ;;  %v613_v61 = vpop.xlane.xlu0 %612 }
 0x125   : > { %v630_v63 = vsub.f32 %v595_v37, %v622_v60  ;;  %v627_v0 = vsub.f32 %v517_v36, %v613_v61 }
 0x127   : > { %v1569_v1 = vpop.eup %1325  ;;  %v645_v3 = vmul.f32 1.442695, %v630_v63  ;;  %v639_v4 = vmul.f32 1.442695, %v627_v0 }
 0x128   : > { %v656_v6 = vsel %vm598_vm1, %v1569_v1, 0.0  ;;  %v1575_v8 = vpop.eup %1327 }
 0x129   : > { %1329 = vpow2.f32 %v645_v3  ;;  %651 = vadd.xlane.f32.xlu2 %v650_v5  ;;  %657 = vadd.xlane.f32.xlu0 %v656_v6  ;;  %v665_v12 = vsel %vm598_vm1, %v1575_v8, 0.0 }
 0x12a   : > { %1331 = vpow2.f32 %v639_v4 }
 0x12b   : > { %1333 = vpow2.f32 %v641_v7 }
 0x12f   : > { %v1577_v9 = vpop.eup %1329 }
 0x130   : > { %v1579_v10 = vpop.eup %1331  ;;  %v668_v11 = vsel %vm598_vm1, %v1577_v9, 0.0 }
 0x131   : > { %669 = vadd.xlane.f32.xlu1 %v668_v11  ;;  %666 = vadd.xlane.f32.xlu0 %v665_v12  ;;  %v659_v13 = vsel %vm598_vm1, %v1579_v10, 0.0  ;;  %v1587_v14 = vpop.eup %1333 }
 0x132   : > { %660 = vadd.xlane.f32.xlu2 %v659_v13  ;;  %v662_v15 = vsel %vm598_vm1, %v1587_v14, 0.0 }
 0x139   : > { %663 = vadd.xlane.f32.xlu0 %v662_v15 }
 0x18e   : > { %v649_v18 = vpop.xlane.xlu1 %648 }
 0x18f   : > { %1335 = vrcp.f32 %v649_v18  ;;  %v682_v25 = vand.u32 2147483648, %v649_v18  ;;  %v680_v27 = vand.u32 2147483647, %v649_v18  ;;  %vm676_vm3 = vweird.f32 %v649_v18 }
 0x191   : > { %v683_v36 = vor.u32 1.1754944e-38, %v682_v25  ;;  %vm681_vm5 = vcmp.eq.f32.partialorder %v680_v27, 8.507059e+37 }
 0x194   : > { %v655_v19 = vpop.xlane.xlu2 %654 }
 0x195   : > { %v1336_v22 = vpop.eup %1335  ;;  %1337 = vrcp.f32 %v655_v19  ;;  %v708_v44 = vand.u32 2147483647, %v655_v19  ;;  %v710_v45 = vand.u32 2147483648, %v655_v19  ;;  %vm704_vm7 = vweird.f32 %v655_v19 }
 0x196   : > { %v672_v23 = vmul.f32 %v1336_v22, %v649_v18  ;;  %vm677_vm2 = vweird.f32 %v1336_v22 }
 0x197   : > { %vm678_vm4 = vmor %vm676_vm3, %vm677_vm2  ;;  %vm709_vm9 = vcmp.eq.f32.partialorder %v708_v44, 8.507059e+37  ;;  %v711_v56 = vor.u32 1.1754944e-38, %v710_v45 }
 0x198   : > { %v673_v24 = vsub.f32 1.0, %v672_v23 }
 0x19a   : > { %v674_v26 = vmul.f32 %v1336_v22, %v673_v24 }
 0x19b   : > { %v1338_v28 = vpop.eup %1337 }
 0x19c   : > { %v675_v29 = vadd.f32 %v1336_v22, %v674_v26  ;;  %v700_v30 = vmul.f32 %v1338_v28, %v655_v19  ;;  %v652_v31 = vpop.xlane.xlu2 %651  ;;  %v1602_v32 = vpop.xlane.xlu0 %657  ;;  %vm705_vm6 = vweird.f32 %v1338_v28 }
 0x19d   : > { %1339 = vrcp.f32 %v652_v31  ;;  %vm1617_vm8 = vmor %vm704_vm7, %vm705_vm6  ;;  %v694_v58 = vand.u32 2147483647, %v652_v31  ;;  %v696_v59 = vand.u32 2147483648, %v652_v31  ;;  %v722_v61 = vand.u32 2147483647, %v1602_v32 }
 0x19e   : > { %v679_v37 = vsel %vm678_vm4, %v1336_v22, %v675_v29  ;;  %v701_v38 = vsub.f32 1.0, %v700_v30  ;;  %1341 = vrcp.f32 %v1602_v32  ;;  %v724_v2 = vand.u32 2147483648, %v1602_v32 }
 0x19f   : > { %v684_v39 = vsel %vm681_vm5, %v683_v36, %v679_v37  ;;  %vm690_vm12 = vweird.f32 %v652_v31  ;;  %vm718_vm13 = vweird.f32 %v1602_v32  ;;  %vm695_vm15 = vcmp.eq.f32.partialorder %v694_v58, 8.507059e+37 }
 0x1a0   : > { %v702_v40 = vmul.f32 %v1338_v28, %v701_v38  ;;  %v783_v41 = vmul.f32 %v1559_v48, %v684_v39  ;;  %v697_v6 = vor.u32 1.1754944e-38, %v696_v59  ;;  %vm723_vm3 = vcmp.eq.f32.partialorder %v722_v61, 8.507059e+37 }
 0x1a1   : > { %v725_v13 = vor.u32 1.1754944e-38, %v724_v2 }
 0x1a2   : > { %v703_v43 = vadd.f32 %v1338_v28, %v702_v40  ;;  %791 = vst.msk [vmem:[%s1612_s22] sm:$0xff] %vm598_vm1, %v783_v41  ;;  %1244 = vmatmul.msk.f32.vlgmr.msra.gmra.mxu0 %vm598_vm1, %v783_v41 }
 0x1a3   : > { %v1340_v46 = vpop.eup %1339 }
 0x1a4   : > { %v1342_v47 = vpop.eup %1341  ;;  %v686_v48 = vmul.f32 %v1340_v46, %v652_v31  ;;  %v1621_v50 = vpop.xlane.xlu1 %669  ;;  %v707_v52 = vsel %vm1617_vm8, %v1338_v28, %v703_v43  ;;  %vm691_vm10 = vweird.f32 %v1340_v46 }
 0x1a5   : > { %v1623_v51 = vpop.xlane.xlu0 %666  ;;  %v714_v53 = vmul.f32 %v1342_v47, %v1602_v32  ;;  %1343 = vrcp.f32 %v1621_v50  ;;  %v1629_v55 = vpop.xlane.xlu2 %660  ;;  %v712_v63 = vsel %vm709_vm9, %v711_v56, %v707_v52  ;;  %vm719_vm11 = vweird.f32 %v1342_v47  ;;  %vm692_vm14 = vmor %vm690_vm12, %vm691_vm10 }
 0x1a6   : > { %v687_v57 = vsub.f32 1.0, %v686_v48  ;;  %1345 = vrcp.f32 %v1629_v55  ;;  %v785_v11 = vmul.f32 %v1563_v54, %v712_v63  ;;  %vm720_vm2 = vmor %vm718_vm13, %vm719_vm11  ;;  %v778_v20 = vand.u32 2147483647, %v1621_v50 }
 0x1a7   : > { %v715_v60 = vsub.f32 1.0, %v714_v53  ;;  %1347 = vrcp.f32 %v1623_v51  ;;  %vm774_vm4 = vweird.f32 %v1621_v50  ;;  %v780_v24 = vand.u32 2147483648, %v1621_v50 }
 0x1a8   : > { %v688_v0 = vmul.f32 %v1340_v46, %v687_v57  ;;  %793 = vst.msk [vmem:[%s1612_s22 + $0x10] sm:$0xff] %vm598_vm1, %v785_v11  ;;  %1246 = vmatmul.msk.f32.vlgmr.msra.gmra.mxu2 %vm598_vm1, %v785_v11  ;;  %vm732_vm5 = vweird.f32 %v1629_v55  ;;  %v736_v25 = vand.u32 2147483647, %v1629_v55  ;;  %vm1652_vm7 = vcmp.eq.f32.partialorder %v778_v20, 8.507059e+37 }
 0x1a9   : > { %v716_v3 = vmul.f32 %v1342_v47, %v715_v60  ;;  %v738_v31 = vand.u32 2147483648, %v1629_v55  ;;  %v764_v32 = vand.u32 2147483647, %v1623_v51  ;;  %v781_v37 = vor.u32 1.1754944e-38, %v780_v24 }
 0x1aa   : > { %v689_v4 = vadd.f32 %v1340_v46, %v688_v0  ;;  %vm1664_vm10 = vcmp.eq.f32.partialorder %v736_v25, 8.507059e+37  ;;  %v766_v39 = vand.u32 2147483648, %v1623_v51  ;;  %vm760_vm13 = vweird.f32 %v1623_v51 }
 0x1ab   : > { %v1344_v5 = vpop.eup %1343  ;;  %v717_v7 = vadd.f32 %v1342_v47, %v716_v3  ;;  %v739_v44 = vor.u32 1.1754944e-38, %v738_v31 }
 0x1ac   : > { %v693_v12 = vsel %vm692_vm14, %v1340_v46, %v689_v4  ;;  %v770_v15 = vmul.f32 %v1344_v5, %v1621_v50  ;;  %v1346_v17 = vpop.eup %1345  ;;  %vm775_vm6 = vweird.f32 %v1344_v5  ;;  %vm765_vm14 = vcmp.eq.f32.partialorder %v764_v32, 8.507059e+37 }
 0x1ad   : > { %v1638_v16 = vpop.xlane.xlu0 %663  ;;  %v698_v18 = vsel %vm695_vm15, %v697_v6, %v693_v12  ;;  %v721_v19 = vsel %vm720_vm2, %v1342_v47, %v717_v7  ;;  %v728_v22 = vmul.f32 %v1346_v17, %v1629_v55  ;;  %v1348_v23 = vpop.eup %1347  ;;  %vm733_vm8 = vweird.f32 %v1346_v17  ;;  %vm776_vm9 = vmor %vm774_vm4, %vm775_vm6 }
 0x1ae   : > { %1349 = vrcp.f32 %v1638_v16  ;;  %v726_v54 = vsel %vm723_vm3, %v725_v13, %v721_v19  ;;  %v771_v21 = vsub.f32 1.0, %v770_v15  ;;  %v784_v26 = vmul.f32 %v1567_v62, %v698_v18  ;;  %vm734_vm12 = vmor %vm732_vm5, %vm733_vm8 }
 0x1af   : > { %v729_v28 = vsub.f32 1.0, %v728_v22  ;;  %v756_v29 = vmul.f32 %v1348_v23, %v1623_v51  ;;  %v786_v62 = vmul.f32 %v1569_v1, %v726_v54  ;;  %vm761_vm11 = vweird.f32 %v1348_v23 }
 0x1b0   : > { %v772_v27 = vmul.f32 %v1344_v5, %v771_v21  ;;  %792 = vst.msk [vmem:[%s1612_s22 + $0x8] sm:$0xff] %vm598_vm1, %v784_v26  ;;  %1245 = vmatmul.msk.f32.vlgmr.msra.gmra.mxu1 %vm598_vm1, %v784_v26  ;;  %vm762_vm15 = vmor %vm760_vm13, %vm761_vm11  ;;  %v767_v50 = vor.u32 1.1754944e-38, %v766_v39  ;;  %v750_v52 = vand.u32 2147483647, %v1638_v16  ;;  %v752_v53 = vand.u32 2147483648, %v1638_v16 }
 0x1b1   : > { %v730_v34 = vmul.f32 %v1346_v17, %v729_v28  ;;  %v757_v35 = vsub.f32 1.0, %v756_v29  ;;  %794 = vst.msk [vmem:[%s1612_s22 + $0x18] sm:$0xff] %vm598_vm1, %v786_v62  ;;  %1247 = vmatmul.msk.f32.vlgmr.msra.gmra.mxu3 %vm598_vm1, %v786_v62  ;;  %vm746_vm3 = vweird.f32 %v1638_v16 }
 0x1b2   : > { %v773_v33 = vadd.f32 %v1344_v5, %v772_v27  ;;  %v753_v59 = vor.u32 1.1754944e-38, %v752_v53  ;;  %vm751_vm5 = vcmp.eq.f32.partialorder %v750_v52, 8.507059e+37 }
 0x1b3   : > { %v731_v40 = vadd.f32 %v1346_v17, %v730_v34  ;;  %v758_v41 = vmul.f32 %v1348_v23, %v757_v35 }
 0x1b4   : > { %v1350_v36 = vpop.eup %1349  ;;  %v777_v1 = vsel %vm776_vm9, %v1344_v5, %v773_v33 }
 0x1b5   : > { %v742_v42 = vmul.f32 %v1350_v36, %v1638_v16  ;;  %v782_v43 = vsel %vm1652_vm7, %v781_v37, %v777_v1  ;;  %v735_v46 = vsel %vm734_vm12, %v1346_v17, %v731_v40  ;;  %v759_v47 = vadd.f32 %v1348_v23, %v758_v41 }
 0x1b6   : > { %v790_v45 = vmul.f32 %v1577_v9, %v782_v43  ;;  %v740_v48 = vsel %vm1664_vm10, %v739_v44, %v735_v46  ;;  %vm747_vm2 = vweird.f32 %v1350_v36 }
 0x1b7   : > { %v743_v49 = vsub.f32 1.0, %v742_v42  ;;  %v787_v51 = vmul.f32 %v1579_v10, %v740_v48  ;;  %v763_v55 = vsel %vm762_vm15, %v1348_v23, %v759_v47  ;;  %vm748_vm4 = vmor %vm746_vm3, %vm747_vm2 }
 0x1b8   : > { %798 = vst.msk [vmem:[%s1612_s22 + $0x38] sm:$0xff] %vm598_vm1, %v790_v45  ;;  %v768_v56 = vsel %vm765_vm14, %v767_v50, %v763_v55 }
 0x1b9   : > { %v744_v9 = vmul.f32 %v1350_v36, %v743_v49  ;;  %795 = vst.msk [vmem:[%s1612_s22 + $0x20] sm:$0xff] %vm598_vm1, %v787_v51  ;;  %1248 = vmatmul.msk.f32.vlgmr.msrb.gmra.mxu0 %vm598_vm1, %v787_v51  ;;  %v789_v58 = vmul.f32 %v1575_v8, %v768_v56  ;;  %1251 = vmatmul.msk.f32.vlgmr.msrb.gmra.mxu3 %vm598_vm1, %v790_v45 }
 0x1bb   : > { %v745_v57 = vadd.f32 %v1350_v36, %v744_v9  ;;  %797 = vst.msk [vmem:[%s1612_s22 + $0x30] sm:$0xff] %vm598_vm1, %v789_v58  ;;  %1250 = vmatmul.msk.f32.vlgmr.msrb.gmra.mxu2 %vm598_vm1, %v789_v58 }
 0x1bd   : > { %v749_v10 = vsel %vm748_vm4, %v1350_v36, %v745_v57 }
 0x1be   : > { %v754_v60 = vsel %vm751_vm5, %v753_v59, %v749_v10 }
 0x1bf   : > { %v788_v61 = vmul.f32 %v1587_v14, %v754_v60 }
 0x1c1   : > { %796 = vst.msk [vmem:[%s1612_s22 + $0x28] sm:$0xff] %vm598_vm1, %v788_v61  ;;  %1249 = vmatmul.msk.f32.vlgmr.msrb.gmra.mxu1 %vm598_vm1, %v788_v61 }
 0x1c2   : > { %1378 = shalt.err (!%p1375_p5)
}
 0x1c3   : > { %s1431_s14 = smov 128   ;;  %s1432_s22 = smov 8  }
 0x1c4   : > { %1262 = dma.vmem_to_hbm [thread:$0]  (%p1498_p4), %s1024_s26, 1024, %s1026_s7, %s1004_s8, %s1431_s14, %s1431_s14, %s1432_s22  }
 0x1c5   : > { %s354_s5 = scalar_lea.vmem %s1755_s3, %s1515_s30 }
 0x21f   : > { %v819_v8 = vpop.f32.mrf.mxu0 }
 0x220   : > { %983 = vst.msk [vmem:[%s354_s5] sm:$0xff] %vm389_vm0, %v819_v8 }
 0x22b   : > { %v865_v63 = vpop.f32.mrf.mxu2 }
 0x22c   : > { %985 = vst.msk [vmem:[%s354_s5 + $0x10] sm:$0xff] %vm389_vm0, %v865_v63 }
 0x22d   : > { %v842_v14 = vpop.f32.mrf.mxu1 }
 0x22e   : > { %984 = vst.msk [vmem:[%s354_s5 + $0x8] sm:$0xff] %vm389_vm0, %v842_v14 }
 0x234   : > { %v888_v0 = vpop.f32.mrf.mxu3 }
 0x235   : > { %986 = vst.msk [vmem:[%s354_s5 + $0x18] sm:$0xff] %vm389_vm0, %v888_v0 }
 0x236   : > { %v911_v2 = vpop.f32.mrf.mxu0 }
 0x237   : > { %987 = vst.msk [vmem:[%s354_s5 + $0x20] sm:$0xff] %vm389_vm0, %v911_v2 }
 0x23c   : > { %v980_v4 = vpop.f32.mrf.mxu3 }
 0x23d   : > { %990 = vst.msk [vmem:[%s354_s5 + $0x38] sm:$0xff] %vm389_vm0, %v980_v4 }
 0x23e   : > { %v934_v3 = vpop.f32.mrf.mxu1  ;;  %v957_v5 = vpop.f32.mrf.mxu2 }
 0x23f   : > { %988 = vst.msk [vmem:[%s354_s5 + $0x28] sm:$0xff] %vm389_vm0, %v934_v3 }
 0x240   : > { %989 = vst.msk [vmem:[%s354_s5 + $0x30] sm:$0xff] %vm389_vm0, %v957_v5 }
 0x241 PF: > { %p1268_p4 = scmp.ge.s32.totalorder %s1429_s20, 2  ;;  %s1055_s25 = sand.u32 1, %s1409_s15  }
 0x242   : > { %s1056_s30 = scalar_lea.sflag [#allocation3], %s1055_s25 }
 0x243   : > { %p1265_p6 = pnand %p1268_p4, %p1505_p8 }
 0x245   : > { %p1266_p7 = pneg %p1265_p6 }
 0x247   : > { %1404 = dma.done.wait (%p1266_p7), %s1056_s30, 1024  }
 0x248   : > { %1406 = vsyncadd (%p1266_p7), %s1056_s30, 4294966272  ;;  %s18_s20 = sadd.s32 1, %s1429_s20   ;;  %s1765_s15 = smov %s1413_s16 }
 0x249   : > { %p15_p9 = scmp.ge.s32.totalorder %s18_s20, 4   ;;  %s1766_s16 = smov %s1417_s17 }
 0x24a   : > { %s1767_s17 = smov %s1511_s28  ;;  %s1768_s18 = smov %s1425_s19 }
 0x24b   : > { %s1769_s19 = smov %s1771_s23  ;;  %17 = sbr.rel (!%p15_p9) target bundleno = 4 (0x4), region = 85 }
 0x250   :  { %1062 = vsyncpa [#allocation3], 1 }
 0x251   :  { %1064 = vsyncpa [#allocation3 + $0x1], 1 }

</bundles_post_ra>
